<compile_context>
chip_gen: v6e
topology: v6e:2x2x1
jax: 0.10.0
libtpu: 0.0.40
codegen_flags: <defaults>
</compile_context>

<pallas_src>
import functools

import jax
import jax.numpy as jnp
from jax.experimental import pallas as pl
from jax.experimental.pallas import tpu as pltpu

P_DROP = 0.1
_KEEP_SCALE = 1.0 / (1.0 - P_DROP)
_DROP_THRESHOLD = int(P_DROP * (1 << 32))  # keep iff hash bits >= threshold
_LANE = 128                                # lane-dense output padding


def _round_up(n, m):
    return (n + m - 1) // m * m


def _hash_bits(seed_u32, shape, row_offset):
    """Per-element uint32 hash (splitmix32-style finalizer) on the VPU.

    Counter = global element index (tile row offset folded in), XOR'd with the
    seed. Pure integer ops -> lowers on Mosaic and in interpret mode.
    """
    rows, cols = shape
    r = jax.lax.broadcasted_iota(jnp.int32, shape, 0) + row_offset
    c = jax.lax.broadcasted_iota(jnp.int32, shape, 1)
    x = (r * cols + c).astype(jnp.uint32) ^ seed_u32
    x = x + jnp.uint32(0x9E3779B9)
    x = x ^ (x >> 16)
    x = x * jnp.uint32(0x85EBCA6B)
    x = x ^ (x >> 13)
    x = x * jnp.uint32(0xC2B2AE35)
    x = x ^ (x >> 16)
    return x


def mlp_kernel(seed_ref, x_ref, w1_ref, b1_ref, w2_ref, b2_ref, o_ref, *, training):
    # ---- linear1 + bias (MXU + VPU); biases are resident (1, H) refs ----
    h = jnp.dot(x_ref[...], w1_ref[...], preferred_element_type=jnp.float32)
    h = h + b1_ref[...]

    # ---- ReLU (VPU) ----
    h = jnp.maximum(h, 0.0)

    # ---- Dropout p=0.1 (training semantics): int-threshold compare + fused select ----
    if training:
        tb = h.shape[0]
        row_off = pl.program_id(0) * tb          # distinct randomness per batch tile
        bits = _hash_bits(seed_ref[0].astype(jnp.uint32), h.shape, row_off)
        keep = bits >= jnp.uint32(_DROP_THRESHOLD)
        h = jnp.where(keep, h * jnp.float32(_KEEP_SCALE), jnp.float32(0.0))

    # ---- linear2 + bias; lane-dense (TB, 128) output slab (cols >= out_dim are 0) ----
    out = jnp.dot(h, w2_ref[...], preferred_element_type=jnp.float32)
    out = out + b2_ref[...]
    o_ref[...] = out.astype(o_ref.dtype)


def toy_model_forward(x, w1, b1, w2, b2, seed, *, training=True, block_b=512):
    """x: (B, in). w1: (in, hid), b1: (hid,), w2: (hid, out), b2: (out,).

    Weights are stored pre-transposed as (in_features, out_features) so the hot
    path is a plain `x @ W + b` on the MXU.
    """
    B, in_dim = x.shape
    hid = w1.shape[1]
    out_dim = w2.shape[1]

    # Batch tile: multiple of 8, divides the (padded) batch; whole batch if small.
    # block_b=512 keeps the double-buffered x/out tiles comfortably inside the
    # scoped-VMEM default on every generation (v5e 16 MiB .. v7x 32 MiB).
    TB = min(block_b, _round_up(B, 8))
    B_pad = _round_up(B, TB)
    if B_pad != B:
        x = jnp.pad(x, ((0, B_pad - B), (0, 0)))

    # Lane-dense output: pad out features to a multiple of 128 so the final
    # store is an unmasked vst; slice back in the wrapper.
    out_pad_dim = _round_up(out_dim, _LANE)
    w2p = jnp.pad(w2, ((0, 0), (0, out_pad_dim - out_dim)))
    b2p = jnp.pad(b2, (0, out_pad_dim - out_dim)).reshape(1, out_pad_dim)
    b1p = b1.reshape(1, hid)
    seed_arr = jnp.asarray([seed], dtype=jnp.int32)

    grid_spec = pltpu.PrefetchScalarGridSpec(
        num_scalar_prefetch=1,                    # seed -> SMEM
        grid=(B_pad // TB,),
        in_specs=[
            pl.BlockSpec((TB, in_dim), lambda i, s: (i, 0)),        # x tile
            pl.BlockSpec((in_dim, hid), lambda i, s: (0, 0)),       # w1 (resident)
            pl.BlockSpec((1, hid), lambda i, s: (0, 0)),            # b1 (resident)
            pl.BlockSpec((hid, out_pad_dim), lambda i, s: (0, 0)),  # w2 (resident)
            pl.BlockSpec((1, out_pad_dim), lambda i, s: (0, 0)),    # b2 (resident)
        ],
        out_specs=pl.BlockSpec((TB, out_pad_dim), lambda i, s: (i, 0)),
    )

    out_padded = pl.pallas_call(
        functools.partial(mlp_kernel, training=training),
        out_shape=jax.ShapeDtypeStruct((B_pad, out_pad_dim), x.dtype),
        grid_spec=grid_spec,
        compiler_params=pltpu.CompilerParams(
            # Batch tiles are independent -> shard across TensorCores on v7x;
            # no-op on v5e/v6e (1 TC).
            dimension_semantics=("parallel",),
        ),
    )(seed_arr, x, w1, b1p, w2p, b2p)

    return out_padded[:B, :out_dim]


if __name__ == "__main__":
    input_size, hidden_size, output_size = 10, 20, 5
    batch = 8

    key = jax.random.PRNGKey(0)
    kx, kw1, kb1, kw2, kb2 = jax.random.split(key, 5)

    # Deterministic parameter init mimicking torch.nn.Linear's U(-1/sqrt(fan_in), +).
    lim1 = 1.0 / (input_size ** 0.5)
    lim2 = 1.0 / (hidden_size ** 0.5)
    # Stored already transposed: (in_features, out_features).
    w1 = jax.random.uniform(kw1, (input_size, hidden_size), jnp.float32, -lim1, lim1)
    b1 = jax.random.uniform(kb1, (hidden_size,), jnp.float32, -lim1, lim1)
    w2 = jax.random.uniform(kw2, (hidden_size, output_size), jnp.float32, -lim2, lim2)
    b2 = jax.random.uniform(kb2, (output_size,), jnp.float32, -lim2, lim2)

    x = jax.random.normal(kx, (batch, input_size), jnp.float32)

    # Eval-mode pass (dropout bypassed) checked against a pure-JAX reference.
    out_eval = jax.block_until_ready(
        toy_model_forward(x, w1, b1, w2, b2, seed=1234, training=False))
    ref = jnp.maximum(x @ w1 + b1, 0.0) @ w2 + b2
    assert out_eval.shape == (batch, output_size), out_eval.shape
    assert jnp.allclose(out_eval, ref, atol=1e-5, rtol=1e-5)

    # Training-mode pass (stochastic dropout, deterministic given the seed).
    out = jax.block_until_ready(
        toy_model_forward(x, w1, b1, w2, b2, seed=1234, training=True))
    assert out.shape == (batch, output_size), out.shape
    print("KERNEL_OK")
</pallas_src>

<mosaic_0001>
module attributes {stable_mosaic.version = 11 : i64} {
  func.func @mlp_kernel(%arg0: i32, %arg1: memref<1xi32, #tpu.memory_space<smem>>, %arg2: memref<8x10xf32, #tpu.memory_space<vmem>>, %arg3: memref<10x20xf32, #tpu.memory_space<vmem>>, %arg4: memref<1x20xf32, #tpu.memory_space<vmem>>, %arg5: memref<20x128xf32, #tpu.memory_space<vmem>>, %arg6: memref<1x128xf32, #tpu.memory_space<vmem>>, %arg7: memref<8x128xf32, #tpu.memory_space<vmem>>) attributes {dimension_semantics = [#tpu.dimension_semantics<parallel>], iteration_bounds = array<i64: 1>, scalar_prefetch = 1 : i64, scratch_operands = 0 : i64, tpu.core_type = #tpu.core_type<tc>, window_params = [{transform_indices = @transform_0, window_bounds = array<i64: 8, 10>}, {pipeline_mode = #tpu.pipeline_mode<synchronous>, transform_indices = @transform_1, window_bounds = array<i64: 10, 20>}, {pipeline_mode = #tpu.pipeline_mode<synchronous>, transform_indices = @transform_2, window_bounds = array<i64: 1, 20>}, {pipeline_mode = #tpu.pipeline_mode<synchronous>, transform_indices = @transform_3, window_bounds = array<i64: 20, 128>}, {pipeline_mode = #tpu.pipeline_mode<synchronous>, transform_indices = @transform_4, window_bounds = array<i64: 1, 128>}, {transform_indices = @transform_5, window_bounds = array<i64: 8, 128>}]} {
    %c0 = arith.constant 0 : index
    %c0_0 = arith.constant 0 : index
    %0 = vector.load %arg2[%c0, %c0_0] : memref<8x10xf32, #tpu.memory_space<vmem>>, vector<8x10xf32>
    %c0_1 = arith.constant 0 : index
    %c0_2 = arith.constant 0 : index
    %1 = vector.load %arg3[%c0_1, %c0_2] : memref<10x20xf32, #tpu.memory_space<vmem>>, vector<10x20xf32>
    %cst = arith.constant dense<0.000000e+00> : vector<8x20xf32>
    %2 = tpu.matmul %0, %1, %cst {dimension_numbers = #tpu.dot_dimension_numbers<[1], [0], [0], [1], [0, 0, 1, 1], [], []>} : vector<8x10xf32>, vector<10x20xf32>, vector<8x20xf32> -> vector<8x20xf32>
    %c0_3 = arith.constant 0 : index
    %c0_4 = arith.constant 0 : index
    %3 = vector.load %arg4[%c0_3, %c0_4] : memref<1x20xf32, #tpu.memory_space<vmem>>, vector<1x20xf32>
    %4 = vector.broadcast %3 : vector<1x20xf32> to vector<8x20xf32>
    %5 = arith.addf %2, %4 : vector<8x20xf32>
    %cst_5 = arith.constant 0.000000e+00 : f32
    %6 = vector.broadcast %cst_5 : f32 to vector<8x20xf32>
    %7 = arith.maximumf %5, %6 : vector<8x20xf32>
    %c0_6 = arith.constant 0 : index
    %c0_7 = arith.constant 0 : index
    %8 = vector.load %arg5[%c0_6, %c0_7] : memref<20x128xf32, #tpu.memory_space<vmem>>, vector<20x128xf32>
    %cst_8 = arith.constant dense<0.000000e+00> : vector<8x128xf32>
    %9 = tpu.matmul %7, %8, %cst_8 {dimension_numbers = #tpu.dot_dimension_numbers<[1], [0], [0], [1], [0, 0, 1, 1], [], []>} : vector<8x20xf32>, vector<20x128xf32>, vector<8x128xf32> -> vector<8x128xf32>
    %c0_9 = arith.constant 0 : index
    %c0_10 = arith.constant 0 : index
    %10 = vector.load %arg6[%c0_9, %c0_10] : memref<1x128xf32, #tpu.memory_space<vmem>>, vector<1x128xf32>
    %11 = vector.broadcast %10 : vector<1x128xf32> to vector<8x128xf32>
    %12 = arith.addf %9, %11 : vector<8x128xf32>
    %c0_11 = arith.constant 0 : index
    %c0_12 = arith.constant 0 : index
    %13 = vector.load %arg7[%c0_11, %c0_12] : memref<8x128xf32, #tpu.memory_space<vmem>>, vector<8x128xf32>
    tpu.vector_store %arg7[%c0_11, %c0_12], %12 {strides = array<i32>} : memref<8x128xf32, #tpu.memory_space<vmem>>, vector<8x128xf32>,
    return
  }
  func.func @transform_0(%arg0: i32, %arg1: memref<1xi32, #tpu.memory_space<smem>>) -> (i32, i32) {
    %c0_i32 = arith.constant 0 : i32
    %c0_i32_0 = arith.constant 0 : i32
    return %arg0, %c0_i32 : i32, i32
  }
  func.func @transform_1(%arg0: i32, %arg1: memref<1xi32, #tpu.memory_space<smem>>) -> (i32, i32) {
    %c0_i32 = arith.constant 0 : i32
    %c0_i32_0 = arith.constant 0 : i32
    %c0_i32_1 = arith.constant 0 : i32
    return %c0_i32, %c0_i32_0 : i32, i32
  }
  func.func @transform_2(%arg0: i32, %arg1: memref<1xi32, #tpu.memory_space<smem>>) -> (i32, i32) {
    %c0_i32 = arith.constant 0 : i32
    %c0_i32_0 = arith.constant 0 : i32
    %c0_i32_1 = arith.constant 0 : i32
    return %c0_i32, %c0_i32_0 : i32, i32
  }
  func.func @transform_3(%arg0: i32, %arg1: memref<1xi32, #tpu.memory_space<smem>>) -> (i32, i32) {
    %c0_i32 = arith.constant 0 : i32
    %c0_i32_0 = arith.constant 0 : i32
    %c0_i32_1 = arith.constant 0 : i32
    return %c0_i32, %c0_i32_0 : i32, i32
  }
  func.func @transform_4(%arg0: i32, %arg1: memref<1xi32, #tpu.memory_space<smem>>) -> (i32, i32) {
    %c0_i32 = arith.constant 0 : i32
    %c0_i32_0 = arith.constant 0 : i32
    %c0_i32_1 = arith.constant 0 : i32
    return %c0_i32, %c0_i32_0 : i32, i32
  }
  func.func @transform_5(%arg0: i32, %arg1: memref<1xi32, #tpu.memory_space<smem>>) -> (i32, i32) {
    %c0_i32 = arith.constant 0 : i32
    %c0_i32_0 = arith.constant 0 : i32
    return %arg0, %c0_i32 : i32, i32
  }
}

</mosaic_0001>

<bundles_post_ra>
// kernel: tpu_custom_call.1
= control target key start
LH: loop header
LB: loop body
LE: loop exit
PB: predicated region body
PF: predicated region fallthrough
CT: control target
= control target key end

     0   :  { %12 = vsyncpa [#allocation5], 0  ;;  %s440_s0 = inlined_call_operand.<no memory space> [shape: s32[1], index: 0, kind: input, shape index: {}]   ;;  %s441_s1 = inlined_call_operand.hbm [shape: f32[8,10], index: 1, kind: input, shape index: {}]   ;;  %s442_s2 = inlined_call_operand.hbm [shape: f32[10,20], index: 2, kind: input, shape index: {}]   ;;  %s443_s3 = inlined_call_operand.vmem [shape: f32[1,20], index: 3, kind: input, shape index: {}]   ;;  %s444_s4 = inlined_call_operand.hbm [shape: f32[20,128], index: 4, kind: input, shape index: {}]   ;;  %s445_s5 = inlined_call_operand.vmem [shape: f32[1,128], index: 5, kind: input, shape index: {}]   ;;  %s446_s6 = inlined_call_operand.hbm [shape: f32[8,128], index: 6, kind: output, shape index: {}]  }
   0x1   :  { %13 = vsyncpa [#allocation8], 0 }
   0x2   :  { %14 = vsyncpa [#allocation6], 0  ;;  %s379_s0 = smov [#allocation7]  }
   0x3   :  { %s30_s21 = sshll.u32 %s379_s0, 4  ;;  %s31_s21 = int_to_ptr.vmem [resolvable:$true] %s30_s21 }
   0x4   :  { %s301_s22 = scalar_lea.vmem %s31_s21, 256  ;;  %p306_p1 = scmp.lt.s32.totalorder %s31_s21, %s31_s21 }
   0x5   :  { %p302_p0 = scmp.ne.s32.totalorder %s31_s21, %s301_s22  ;;  %p307_p2 = scmp.lt.s32.totalorder %s301_s22, %s301_s22 }
   0x7   :  { %p308_p3 = por %p307_p2, %p306_p1 }
   0x9   :  { %p309_p4 = pnand %p308_p3, %p302_p0 }
   0xb   :  { %312 = shalt.err (!%p309_p4)
}
   0xc   :  { %s380_s23 = smov 128   ;;  %s381_s24 = smov 8  }
   0xd   :  { %36 = dma.hbm_to_vmem [thread:$0]  %s442_s2, 256, %s31_s21, [#allocation8], %s380_s23, %s380_s23, %s381_s24  }
   0xe   :  { %s382_s27 = smov [#allocation4]   ;;  %s383_s29 = smov [#allocation9]  }
   0xf   :  { %s21_s28 = sshll.u32 %s382_s27, 4  ;;  %s44_s30 = sshll.u32 %s383_s29, 4  ;;  %s22_s28 = int_to_ptr.vmem [resolvable:$true] %s21_s28  ;;  %s45_s30 = int_to_ptr.vmem [resolvable:$true] %s44_s30 }
  0x10   :  { %s321_s7 = scalar_lea.vmem %s22_s28, 128  ;;  %p326_p6 = scmp.lt.s32.totalorder %s22_s28, %s22_s28 }
  0x11   :  { %p322_p5 = scmp.ne.s32.totalorder %s22_s28, %s321_s7  ;;  %p327_p7 = scmp.lt.s32.totalorder %s321_s7, %s321_s7 }
  0x13   :  { %p328_p8 = por %p327_p7, %p326_p6 }
  0x15   :  { %p329_p9 = pnand %p328_p8, %p322_p5 }
  0x17   :  { %332 = shalt.err (!%p329_p9)
}
  0x18   :  { %24 = dma.hbm_to_vmem [thread:$0]  %s441_s1, 128, %s22_s28, [#allocation5]  }
  0x19   :  { %s341_s10 = scalar_lea.vmem %s45_s30, 384  ;;  %p346_p11 = scmp.lt.s32.totalorder %s45_s30, %s45_s30 }
  0x1a   :  { %p342_p10 = scmp.ne.s32.totalorder %s45_s30, %s341_s10  ;;  %p347_p12 = scmp.lt.s32.totalorder %s341_s10, %s341_s10 }
  0x1c   :  { %p348_p13 = por %p347_p12, %p346_p11 }
  0x1e   :  { %p349_p0 = pnand %p348_p13, %p342_p10 }
  0x20   :  { %352 = shalt.err (!%p349_p0)
}
  0x21   :  { %50 = dma.hbm_to_vmem [thread:$0]  %s444_s4, 384, %s45_s30, [#allocation8], %s380_s23, %s380_s23, %s381_s24  }
  0x22   :  { %373 = dma.done.wait [#allocation5], 128  }
  0x23   :  { %374 = vsyncadd [#allocation5], 4294967168 }
  0x24   :  { %375 = dma.done.wait [#allocation8], 640  }
  0x25   :  { %376 = vsyncadd [#allocation8], 4294966656  ;;  %v384_v0 = vmov 0.0   ;;  %vm385_vm0 = vmmov 0   ;;  %vm76_vm1 = vcmask 1041408   ;;  %v63_v2 = vld [vmem:[#allocation7] sm:$0xff] }
  0x26   :  { %269 = vmatprep.subr.mxu0 %v384_v0  ;;  %273 = vmatprep.mubr.msk.f32.mxu0 %vm385_vm0, %v384_v0  ;;  %v64_v1 = vld [vmem:[#allocation7 + $0x8] sm:$0x3]  ;;  %v62_v3 = vld [vmem:[#allocation4] sm:$0xff]  ;;  %vm72_vm2 = vcmask 80896   ;;  %v153_v4 = vld [vmem:[#allocation9 + $0x10] sm:$0xf] }
  0x27   :  { %276 = vmatprep.subr.mxu1 %v384_v0  ;;  %282 = vmatprep.mubr.msk.f32.mxu1 %vm385_vm0, %v384_v0  ;;  %vm165_vm3 = vcmask 1043456   ;;  %v152_v5 = vld [vmem:[#allocation9 + $0x8] sm:$0xff]  ;;  %v151_v6 = vld [vmem:[#allocation9] sm:$0xff]  ;;  %vm161_vm4 = vcmask 162816   ;;  %s386_s14 = smov [#allocation10]  }
  0x28   :  { %270 = vmatpush3.msk.msra.mxu0 %vm76_vm1, %v64_v1  ;;  %277 = vmatpush3.msk.msra.mxu1 %vm165_vm3, %v153_v4  ;;  %v256_v7 = vld [vmem:[%s443_s3] ss:$0 sm:$0xff]  ;;  %s246_s15 = sshll.u32 %s386_s14, 4  ;;  %s247_s15 = int_to_ptr.vmem [resolvable:$true] %s246_s15 }
  0x29   :  { %271 = vmatprep.subr.mxu0 %v384_v0  ;;  %278 = vmatprep.subr.mxu1 %v384_v0  ;;  %v259_v12 = vld [vmem:[%s445_s5] ss:$0 sm:$0xff]  ;;  %s353_s16 = scalar_lea.vmem %s247_s15, 128  ;;  %p358_p2 = scmp.lt.s32.totalorder %s247_s15, %s247_s15 }
  0x2a   :  { %272 = vmatpush3.msra.mxu0 %v63_v2  ;;  %279 = vmatpush3.msra.mxu1 %v152_v5  ;;  %p354_p1 = scmp.ne.s32.totalorder %s247_s15, %s353_s16  ;;  %p359_p3 = scmp.lt.s32.totalorder %s353_s16, %s353_s16 }
  0x2b   :  { %274 = vmatmul.mubr.msk.f32.vlgmr.msra.gmra.mxu0 %vm72_vm2, %v62_v3  ;;  %280 = vmatprep.subr.mxu1 %v384_v0 }
  0x2c   :  { %281 = vmatpush3.msra.mxu1 %v151_v6  ;;  %p360_p4 = por %p359_p3, %p358_p2 }
  0x2e   :  { %p361_p5 = pnand %p360_p4, %p354_p1 }
  0xeb   :  { %v146_v8 = vpop.f32.mrf.mxu0 }
  0xec   :  { %v147_v9 = vadd.f32 %v256_v7, %v146_v8 }
  0xed   :  { %v275_v10 = vpop.f32.mrf.mxu0 }
  0xee   :  { %v150_v11 = vmax.f32 %v147_v9, 0.0 }
  0xf0   :  { %283 = vmatmul.mubr.msk.f32.vlgmr.msra.gmra.mxu1 %vm161_vm4, %v150_v11 }
 0x1b0   :  { %v235_v13 = vpop.f32.mrf.mxu1 }
 0x1b1   :  { %v236_v14 = vadd.f32 %v259_v12, %v235_v13 }
 0x1b2   :  { %v284_v15 = vpop.f32.mrf.mxu1 }
 0x1b3   :  { %239 = vst [vmem:[#allocation10] sm:$0xff] %v236_v14 }
 0x1b4   :  { %364 = shalt.err (!%p361_p5)
}
 0x1b5   :  { %249 = dma.vmem_to_hbm [thread:$0]  %s247_s15, 128, %s446_s6, [#allocation6]  }
 0x1b6   :  { %377 = dma.done.wait [#allocation6], 128  }
 0x1b7   :  { %378 = vsyncadd [#allocation6], 4294967168 }
 0x1b8   :  { %253 = vsyncpa [#allocation5], 1 }
 0x1b9   :  { %254 = vsyncpa [#allocation8], 1 }
 0x1ba   :  { %255 = vsyncpa [#allocation6], 1 }

</bundles_post_ra>
